<compile_context>
chip_gen: v6e
topology: v6e:2x2x1
jax: 0.10.0
libtpu: 0.0.40
codegen_flags: <defaults>
</compile_context>

<pallas_src>
import numpy as np
import jax
import jax.numpy as jnp
from jax.experimental import pallas as pl
from jax.experimental.pallas import tpu as pltpu

INPUT_DIM = 32
HIDDEN_DIM = 32
OUTPUT_DIM = 16
LAYERS = 3
BATCH = 4
LN_EPS = 1e-5
INV_SQRT2 = 1.0 / np.sqrt(2.0)

PACK = 4                          # batch rows packed per 128-lane vreg row
LANES = PACK * HIDDEN_DIM         # 128
SEG = LANES // PACK               # 32 lanes per packed batch row
MAX_PACKED_TILE = 512             # packed rows per grid step (= 2048 batch rows)

# Row layout of pk[16, 128] (each row = a 32-lane parameter vector tiled x4 across lanes):
#   0..2         : embed bias, embed LN gamma, embed LN beta
#   3+3l..5+3l   : layer-l bias, gamma, beta               (l = 0..LAYERS-1)
#   3+3*LAYERS   : fused head bias (lanes 0..15 logits bias, lane 16 value bias)
HEAD_BIAS_ROW = 3 + 3 * LAYERS    # 12
N_VEC_ROWS = 16                   # 13 used rows, padded to a sublane multiple

# Matrix stack wm[6, 128, 128]:
#   0            : embed weight (block-diagonal x4)
#   1..LAYERS    : residual-layer weights (block-diagonal x4)
#   HEAD_MAT     : fused logits+value head (block-diagonal x4)
#   AVG_MAT      : LN block-averaging matrix (1/32 inside each 32-lane segment)
HEAD_MAT = 1 + LAYERS             # 4
AVG_MAT = 2 + LAYERS              # 5
N_MATS = 3 + LAYERS               # 6


def _cdiv(a, b):
    return -(-a // b)


def _round_up(a, m):
    return _cdiv(a, m) * m


def actor_critic_kernel(x_ref, pk_ref, wm_ref, out_ref):
    x = x_ref[...]                                   # [T, 128] f32, 4 batch rows per vreg row
    avg = wm_ref[AVG_MAT]                            # [128, 128] segment-averaging matrix

    def vrow(i):                                     # (1, 128) parameter row (broadcasts)
        return pk_ref[i:i + 1, :]

    def ln_silu(h, gamma, beta):
        # Per-32-lane-segment LayerNorm (biased variance, matches PyTorch) + SiLU.
        # Segment mean / variance come from block-averaging matmuls on the MXU.
        mu = jnp.dot(h, avg, preferred_element_type=jnp.float32)
        d = h - mu
        var = jnp.dot(d * d, avg, preferred_element_type=jnp.float32)
        hn = d * jax.lax.rsqrt(var + LN_EPS)
        hn = hn * gamma + beta
        # sigmoid(x) = 0.5*(1 + tanh(x/2)) -> EUP transcendental, no VPU divide.
        return hn * (0.5 * (jnp.tanh(0.5 * hn) + 1.0))

    # embed = Linear -> LayerNorm -> SiLU -> Dropout (identity in eval mode)
    sc = ln_silu(jnp.dot(x, wm_ref[0], preferred_element_type=jnp.float32) + vrow(0),
                 vrow(1), vrow(2))

    h = sc
    for l in range(LAYERS):                          # unrolled: LAYERS is static
        r = 3 + 3 * l
        y = ln_silu(jnp.dot(h, wm_ref[1 + l], preferred_element_type=jnp.float32) + vrow(r),
                    vrow(r + 1), vrow(r + 2))
        h = (h + y) * INV_SQRT2
    h = (h + sc) * INV_SQRT2

    # Fused heads: one block-diagonal [128,128] matmul; per segment, lanes 0..15 carry
    # the policy logits and lane 16 the state value.  Full-width unmasked store.
    out_ref[...] = (jnp.dot(h, wm_ref[HEAD_MAT], preferred_element_type=jnp.float32)
                    + vrow(HEAD_BIAS_ROW)).astype(out_ref.dtype)


def actor_critic_forward(x, pk, wm):
    B = x.shape[0]
    # Tile selection (packed-row units; 1 packed row = 4 batch rows):
    #  - at most MAX_PACKED_TILE packed rows per grid step,
    #  - tile derived from B so zero padding stays < 8 packed rows per step,
    #  - >= 2 grid steps when the batch allows, so the "parallel" axis can shard across
    #    v7x's two TensorCores (negligible per-step cost on single-TC v5e/v6e).
    p_needed = _cdiv(max(B, 1), PACK)
    p8 = _round_up(p_needed, 8)
    min_steps = 2 if p8 >= 16 else 1
    nsteps = max(_cdiv(p8, MAX_PACKED_TILE), min_steps)
    tile = _round_up(_cdiv(p8, nsteps), 8)
    padded_p = nsteps * tile
    padded_b = padded_p * PACK

    x_p = jnp.pad(x, ((0, padded_b - B), (0, 0))).reshape(padded_p, LANES)

    out = pl.pallas_call(
        actor_critic_kernel,
        out_shape=jax.ShapeDtypeStruct((padded_p, LANES), jnp.float32),
        grid=(nsteps,),
        in_specs=[
            pl.BlockSpec((tile, LANES), lambda i: (i, 0)),   # x: streamed over batch
            pl.BlockSpec(pk.shape, lambda i: (0, 0)),        # params: VMEM-resident
            pl.BlockSpec(wm.shape, lambda i: (0, 0, 0)),     # params: VMEM-resident
        ],
        out_specs=pl.BlockSpec((tile, LANES), lambda i: (i, 0)),
        compiler_params=pltpu.CompilerParams(dimension_semantics=("parallel",)),
    )(x_p, pk, wm)

    rows = out.reshape(padded_b, SEG)                # unpack 4 batch rows per 128-lane slab
    logits = rows[:B, :OUTPUT_DIM]
    value = rows[:B, OUTPUT_DIM:OUTPUT_DIM + 1]
    return logits, value


def init_params(key):
    """Deterministic synthetic parameters matching the module's shapes."""
    ks = jax.random.split(key, 4)

    def lin(k, fan_in, fan_out):
        bound = 1.0 / np.sqrt(fan_in)
        kw, kb = jax.random.split(k)
        w = jax.random.uniform(kw, (fan_in, fan_out), jnp.float32, -bound, bound)
        b = jax.random.uniform(kb, (1, fan_out), jnp.float32, -bound, bound)
        return w, b

    we, be = lin(ks[0], INPUT_DIM, HIDDEN_DIM)
    ge = jnp.ones((1, HIDDEN_DIM), jnp.float32)
    bte = jnp.zeros((1, HIDDEN_DIM), jnp.float32)

    wls, bls = [], []
    for l in range(LAYERS):
        w, b = lin(jax.random.fold_in(ks[1], l), HIDDEN_DIM, HIDDEN_DIM)
        wls.append(w)
        bls.append(b)
    wl = jnp.stack(wls)                              # [LAYERS, H, H]
    bl = jnp.stack(bls)                              # [LAYERS, 1, H]
    gl = jnp.ones((LAYERS, 1, HIDDEN_DIM), jnp.float32)
    btl = jnp.zeros((LAYERS, 1, HIDDEN_DIM), jnp.float32)

    wlog, blog = lin(ks[2], HIDDEN_DIM, OUTPUT_DIM)
    wv, bv = lin(ks[3], HIDDEN_DIM, 1)

    return (we, be, ge, bte, wl, bl, gl, btl, wlog, blog, wv, bv)


def pack_params(params):
    """Coalesce all parameters into two DMA-friendly, lane-packed arrays."""
    (we, be, ge, bte, wl, bl, gl, btl, wlog, blog, wv, bv) = params
    assert INPUT_DIM == HIDDEN_DIM, "4-row lane packing assumes input_dim == hidden_dim"

    def bdiag(w):                                    # (32, 32) -> (128, 128) block-diagonal
        m = jnp.zeros((LANES, LANES), jnp.float32)
        for s in range(PACK):
            m = m.at[s * HIDDEN_DIM:(s + 1) * HIDDEN_DIM,
                     s * HIDDEN_DIM:(s + 1) * HIDDEN_DIM].set(w)
        return m

    def tile4(v):                                    # (1, 32) -> (1, 128)
        return jnp.tile(v, (1, PACK))

    # Fused head as one 32x32 block: cols 0..15 = logits weight, col 16 = value weight.
    head32 = jnp.zeros((HIDDEN_DIM, HIDDEN_DIM), jnp.float32)
    head32 = head32.at[:, :OUTPUT_DIM].set(wlog)
    head32 = head32.at[:, OUTPUT_DIM:OUTPUT_DIM + 1].set(wv)
    head_bias32 = jnp.zeros((1, HIDDEN_DIM), jnp.float32)
    head_bias32 = head_bias32.at[0, :OUTPUT_DIM].set(blog[0])
    head_bias32 = head_bias32.at[0, OUTPUT_DIM].set(bv[0, 0])

    # LN block-averaging matrix: 1/32 inside each 32-lane segment, 0 elsewhere.
    seg_id = np.arange(LANES) // HIDDEN_DIM
    avg = jnp.asarray((seg_id[:, None] == seg_id[None, :]).astype(np.float32) / HIDDEN_DIM)

    mats = [bdiag(we)] + [bdiag(wl[l]) for l in range(LAYERS)] + [bdiag(head32), avg]
    wm = jnp.stack(mats)                             # [N_MATS, 128, 128]

    rows = [tile4(be), tile4(ge), tile4(bte)]
    for l in range(LAYERS):
        rows += [tile4(bl[l]), tile4(gl[l]), tile4(btl[l])]
    rows.append(tile4(head_bias32))                  # row HEAD_BIAS_ROW (= 12)
    pk = jnp.concatenate(rows, axis=0)               # [13, 128]
    pk = jnp.pad(pk, ((0, N_VEC_ROWS - pk.shape[0]), (0, 0)))   # [16, 128]
    return pk, wm


def reference_forward(x, params):
    """Pure-JAX reference of the PyTorch forward (eval mode)."""
    (we, be, ge, bte, wl, bl, gl, btl, wlog, blog, wv, bv) = params

    def ln_silu(h, g, b):
        mu = jnp.mean(h, axis=-1, keepdims=True)
        var = jnp.mean((h - mu) ** 2, axis=-1, keepdims=True)
        hn = (h - mu) / jnp.sqrt(var + LN_EPS) * g + b
        return hn * jax.nn.sigmoid(hn)

    sc = ln_silu(x @ we + be, ge, bte)
    h = sc
    for l in range(LAYERS):
        h = (h + ln_silu(h @ wl[l] + bl[l], gl[l], btl[l])) * INV_SQRT2
    h = (h + sc) * INV_SQRT2
    return h @ wlog + blog, h @ wv + bv


if __name__ == "__main__":
    key = jax.random.PRNGKey(0)
    kx, kp = jax.random.split(key)
    params = init_params(kp)
    pk, wm = pack_params(params)

    # Small primary check (batch=4) plus an odd batch that exercises the 2-step
    # parallel grid and the zero-padding path.
    for b in (BATCH, 100):
        x = jax.random.normal(jax.random.fold_in(kx, b), (b, INPUT_DIM), jnp.float32)
        logits, value = actor_critic_forward(x, pk, wm)
        jax.block_until_ready((logits, value))

        ref_logits, ref_value = reference_forward(x, params)
        np.testing.assert_allclose(np.asarray(logits), np.asarray(ref_logits),
                                   rtol=1e-4, atol=1e-4)
        np.testing.assert_allclose(np.asarray(value), np.asarray(ref_value),
                                   rtol=1e-4, atol=1e-4)
        assert logits.shape == (b, OUTPUT_DIM) and value.shape == (b, 1)

    print("KERNEL_OK")
</pallas_src>

<mosaic_0001>
module attributes {stable_mosaic.version = 11 : i64} {
  func.func @actor_critic_kernel(%arg0: i32, %arg1: memref<8x128xf32, #tpu.memory_space<vmem>>, %arg2: memref<16x128xf32, #tpu.memory_space<vmem>>, %arg3: memref<6x128x128xf32, #tpu.memory_space<vmem>>, %arg4: memref<8x128xf32, #tpu.memory_space<vmem>>) attributes {dimension_semantics = [#tpu.dimension_semantics<parallel>], iteration_bounds = array<i64: 1>, scalar_prefetch = 0 : i64, scratch_operands = 0 : i64, tpu.core_type = #tpu.core_type<tc>, window_params = [{transform_indices = @transform_0, window_bounds = array<i64: 8, 128>}, {pipeline_mode = #tpu.pipeline_mode<synchronous>, transform_indices = @transform_1, window_bounds = array<i64: 16, 128>}, {pipeline_mode = #tpu.pipeline_mode<synchronous>, transform_indices = @transform_2, window_bounds = array<i64: 6, 128, 128>}, {transform_indices = @transform_3, window_bounds = array<i64: 8, 128>}]} {
    %c0 = arith.constant 0 : index
    %c0_0 = arith.constant 0 : index
    %0 = vector.load %arg1[%c0, %c0_0] : memref<8x128xf32, #tpu.memory_space<vmem>>, vector<8x128xf32>
    %c5 = arith.constant 5 : index
    %c0_1 = arith.constant 0 : index
    %c0_2 = arith.constant 0 : index
    %1 = vector.load %arg3[%c5, %c0_1, %c0_2] : memref<6x128x128xf32, #tpu.memory_space<vmem>>, vector<1x128x128xf32>
    %2 = vector.shape_cast %1 : vector<1x128x128xf32> to vector<128x128xf32>
    %c0_3 = arith.constant 0 : index
    %c0_4 = arith.constant 0 : index
    %c0_5 = arith.constant 0 : index
    %3 = vector.load %arg3[%c0_3, %c0_4, %c0_5] : memref<6x128x128xf32, #tpu.memory_space<vmem>>, vector<1x128x128xf32>
    %4 = vector.shape_cast %3 : vector<1x128x128xf32> to vector<128x128xf32>
    %cst = arith.constant dense<0.000000e+00> : vector<8x128xf32>
    %5 = tpu.matmul %0, %4, %cst {dimension_numbers = #tpu.dot_dimension_numbers<[1], [0], [0], [1], [0, 0, 1, 1], [], []>} : vector<8x128xf32>, vector<128x128xf32>, vector<8x128xf32> -> vector<8x128xf32>
    %c0_6 = arith.constant 0 : index
    %c0_7 = arith.constant 0 : index
    %6 = vector.load %arg2[%c0_6, %c0_7] : memref<16x128xf32, #tpu.memory_space<vmem>>, vector<1x128xf32>
    %7 = vector.broadcast %6 : vector<1x128xf32> to vector<8x128xf32>
    %8 = arith.addf %5, %7 : vector<8x128xf32>
    %c1 = arith.constant 1 : index
    %c0_8 = arith.constant 0 : index
    %9 = vector.load %arg2[%c1, %c0_8] : memref<16x128xf32, #tpu.memory_space<vmem>>, vector<1x128xf32>
    %c2 = arith.constant 2 : index
    %c0_9 = arith.constant 0 : index
    %10 = vector.load %arg2[%c2, %c0_9] : memref<16x128xf32, #tpu.memory_space<vmem>>, vector<1x128xf32>
    %cst_10 = arith.constant dense<0.000000e+00> : vector<8x128xf32>
    %11 = tpu.matmul %8, %2, %cst_10 {dimension_numbers = #tpu.dot_dimension_numbers<[1], [0], [0], [1], [0, 0, 1, 1], [], []>} : vector<8x128xf32>, vector<128x128xf32>, vector<8x128xf32> -> vector<8x128xf32>
    %12 = arith.subf %8, %11 : vector<8x128xf32>
    %13 = arith.mulf %12, %12 : vector<8x128xf32>
    %cst_11 = arith.constant dense<0.000000e+00> : vector<8x128xf32>
    %14 = tpu.matmul %13, %2, %cst_11 {dimension_numbers = #tpu.dot_dimension_numbers<[1], [0], [0], [1], [0, 0, 1, 1], [], []>} : vector<8x128xf32>, vector<128x128xf32>, vector<8x128xf32> -> vector<8x128xf32>
    %cst_12 = arith.constant 9.99999974E-6 : f32
    %15 = vector.broadcast %cst_12 : f32 to vector<8x128xf32>
    %16 = arith.addf %14, %15 : vector<8x128xf32>
    %17 = math.rsqrt %16 : vector<8x128xf32>
    %18 = arith.mulf %12, %17 : vector<8x128xf32>
    %19 = vector.broadcast %9 : vector<1x128xf32> to vector<8x128xf32>
    %20 = arith.mulf %18, %19 : vector<8x128xf32>
    %21 = vector.broadcast %10 : vector<1x128xf32> to vector<8x128xf32>
    %22 = arith.addf %20, %21 : vector<8x128xf32>
    %cst_13 = arith.constant 5.000000e-01 : f32
    %23 = vector.broadcast %cst_13 : f32 to vector<8x128xf32>
    %24 = arith.mulf %23, %22 : vector<8x128xf32>
    %25 = math.tanh %24 : vector<8x128xf32>
    %cst_14 = arith.constant 1.000000e+00 : f32
    %26 = vector.broadcast %cst_14 : f32 to vector<8x128xf32>
    %27 = arith.addf %25, %26 : vector<8x128xf32>
    %cst_15 = arith.constant 5.000000e-01 : f32
    %28 = vector.broadcast %cst_15 : f32 to vector<8x128xf32>
    %29 = arith.mulf %28, %27 : vector<8x128xf32>
    %30 = arith.mulf %22, %29 : vector<8x128xf32>
    %c1_16 = arith.constant 1 : index
    %c0_17 = arith.constant 0 : index
    %c0_18 = arith.constant 0 : index
    %31 = vector.load %arg3[%c1_16, %c0_17, %c0_18] : memref<6x128x128xf32, #tpu.memory_space<vmem>>, vector<1x128x128xf32>
    %32 = vector.shape_cast %31 : vector<1x128x128xf32> to vector<128x128xf32>
    %cst_19 = arith.constant dense<0.000000e+00> : vector<8x128xf32>
    %33 = tpu.matmul %30, %32, %cst_19 {dimension_numbers = #tpu.dot_dimension_numbers<[1], [0], [0], [1], [0, 0, 1, 1], [], []>} : vector<8x128xf32>, vector<128x128xf32>, vector<8x128xf32> -> vector<8x128xf32>
    %c3 = arith.constant 3 : index
    %c0_20 = arith.constant 0 : index
    %34 = vector.load %arg2[%c3, %c0_20] : memref<16x128xf32, #tpu.memory_space<vmem>>, vector<1x128xf32>
    %35 = vector.broadcast %34 : vector<1x128xf32> to vector<8x128xf32>
    %36 = arith.addf %33, %35 : vector<8x128xf32>
    %c4 = arith.constant 4 : index
    %c0_21 = arith.constant 0 : index
    %37 = vector.load %arg2[%c4, %c0_21] : memref<16x128xf32, #tpu.memory_space<vmem>>, vector<1x128xf32>
    %c5_22 = arith.constant 5 : index
    %c0_23 = arith.constant 0 : index
    %38 = vector.load %arg2[%c5_22, %c0_23] : memref<16x128xf32, #tpu.memory_space<vmem>>, vector<1x128xf32>
    %cst_24 = arith.constant dense<0.000000e+00> : vector<8x128xf32>
    %39 = tpu.matmul %36, %2, %cst_24 {dimension_numbers = #tpu.dot_dimension_numbers<[1], [0], [0], [1], [0, 0, 1, 1], [], []>} : vector<8x128xf32>, vector<128x128xf32>, vector<8x128xf32> -> vector<8x128xf32>
    %40 = arith.subf %36, %39 : vector<8x128xf32>
    %41 = arith.mulf %40, %40 : vector<8x128xf32>
    %cst_25 = arith.constant dense<0.000000e+00> : vector<8x128xf32>
    %42 = tpu.matmul %41, %2, %cst_25 {dimension_numbers = #tpu.dot_dimension_numbers<[1], [0], [0], [1], [0, 0, 1, 1], [], []>} : vector<8x128xf32>, vector<128x128xf32>, vector<8x128xf32> -> vector<8x128xf32>
    %cst_26 = arith.constant 9.99999974E-6 : f32
    %43 = vector.broadcast %cst_26 : f32 to vector<8x128xf32>
    %44 = arith.addf %42, %43 : vector<8x128xf32>
    %45 = math.rsqrt %44 : vector<8x128xf32>
    %46 = arith.mulf %40, %45 : vector<8x128xf32>
    %47 = vector.broadcast %37 : vector<1x128xf32> to vector<8x128xf32>
    %48 = arith.mulf %46, %47 : vector<8x128xf32>
    %49 = vector.broadcast %38 : vector<1x128xf32> to vector<8x128xf32>
    %50 = arith.addf %48, %49 : vector<8x128xf32>
    %cst_27 = arith.constant 5.000000e-01 : f32
    %51 = vector.broadcast %cst_27 : f32 to vector<8x128xf32>
    %52 = arith.mulf %51, %50 : vector<8x128xf32>
    %53 = math.tanh %52 : vector<8x128xf32>
    %cst_28 = arith.constant 1.000000e+00 : f32
    %54 = vector.broadcast %cst_28 : f32 to vector<8x128xf32>
    %55 = arith.addf %53, %54 : vector<8x128xf32>
    %cst_29 = arith.constant 5.000000e-01 : f32
    %56 = vector.broadcast %cst_29 : f32 to vector<8x128xf32>
    %57 = arith.mulf %56, %55 : vector<8x128xf32>
    %58 = arith.mulf %50, %57 : vector<8x128xf32>
    %59 = arith.addf %30, %58 : vector<8x128xf32>
    %cst_30 = arith.constant 0.707106769 : f32
    %60 = vector.broadcast %cst_30 : f32 to vector<8x128xf32>
    %61 = arith.mulf %59, %60 : vector<8x128xf32>
    %c2_31 = arith.constant 2 : index
    %c0_32 = arith.constant 0 : index
    %c0_33 = arith.constant 0 : index
    %62 = vector.load %arg3[%c2_31, %c0_32, %c0_33] : memref<6x128x128xf32, #tpu.memory_space<vmem>>, vector<1x128x128xf32>
    %63 = vector.shape_cast %62 : vector<1x128x128xf32> to vector<128x128xf32>
    %cst_34 = arith.constant dense<0.000000e+00> : vector<8x128xf32>
    %64 = tpu.matmul %61, %63, %cst_34 {dimension_numbers = #tpu.dot_dimension_numbers<[1], [0], [0], [1], [0, 0, 1, 1], [], []>} : vector<8x128xf32>, vector<128x128xf32>, vector<8x128xf32> -> vector<8x128xf32>
    %c6 = arith.constant 6 : index
    %c0_35 = arith.constant 0 : index
    %65 = vector.load %arg2[%c6, %c0_35] : memref<16x128xf32, #tpu.memory_space<vmem>>, vector<1x128xf32>
    %66 = vector.broadcast %65 : vector<1x128xf32> to vector<8x128xf32>
    %67 = arith.addf %64, %66 : vector<8x128xf32>
    %c7 = arith.constant 7 : index
    %c0_36 = arith.constant 0 : index
    %68 = vector.load %arg2[%c7, %c0_36] : memref<16x128xf32, #tpu.memory_space<vmem>>, vector<1x128xf32>
    %c8 = arith.constant 8 : index
    %c0_37 = arith.constant 0 : index
    %69 = vector.load %arg2[%c8, %c0_37] : memref<16x128xf32, #tpu.memory_space<vmem>>, vector<1x128xf32>
    %cst_38 = arith.constant dense<0.000000e+00> : vector<8x128xf32>
    %70 = tpu.matmul %67, %2, %cst_38 {dimension_numbers = #tpu.dot_dimension_numbers<[1], [0], [0], [1], [0, 0, 1, 1], [], []>} : vector<8x128xf32>, vector<128x128xf32>, vector<8x128xf32> -> vector<8x128xf32>
    %71 = arith.subf %67, %70 : vector<8x128xf32>
    %72 = arith.mulf %71, %71 : vector<8x128xf32>
    %cst_39 = arith.constant dense<0.000000e+00> : vector<8x128xf32>
    %73 = tpu.matmul %72, %2, %cst_39 {dimension_numbers = #tpu.dot_dimension_numbers<[1], [0], [0], [1], [0, 0, 1, 1], [], []>} : vector<8x128xf32>, vector<128x128xf32>, vector<8x128xf32> -> vector<8x128xf32>
    %cst_40 = arith.constant 9.99999974E-6 : f32
    %74 = vector.broadcast %cst_40 : f32 to vector<8x128xf32>
    %75 = arith.addf %73, %74 : vector<8x128xf32>
    %76 = math.rsqrt %75 : vector<8x128xf32>
    %77 = arith.mulf %71, %76 : vector<8x128xf32>
    %78 = vector.broadcast %68 : vector<1x128xf32> to vector<8x128xf32>
    %79 = arith.mulf %77, %78 : vector<8x128xf32>
    %80 = vector.broadcast %69 : vector<1x128xf32> to vector<8x128xf32>
    %81 = arith.addf %79, %80 : vector<8x128xf32>
    %cst_41 = arith.constant 5.000000e-01 : f32
    %82 = vector.broadcast %cst_41 : f32 to vector<8x128xf32>
    %83 = arith.mulf %82, %81 : vector<8x128xf32>
    %84 = math.tanh %83 : vector<8x128xf32>
    %cst_42 = arith.constant 1.000000e+00 : f32
    %85 = vector.broadcast %cst_42 : f32 to vector<8x128xf32>
    %86 = arith.addf %84, %85 : vector<8x128xf32>
    %cst_43 = arith.constant 5.000000e-01 : f32
    %87 = vector.broadcast %cst_43 : f32 to vector<8x128xf32>
    %88 = arith.mulf %87, %86 : vector<8x128xf32>
    %89 = arith.mulf %81, %88 : vector<8x128xf32>
    %90 = arith.addf %61, %89 : vector<8x128xf32>
    %cst_44 = arith.constant 0.707106769 : f32
    %91 = vector.broadcast %cst_44 : f32 to vector<8x128xf32>
    %92 = arith.mulf %90, %91 : vector<8x128xf32>
    %c3_45 = arith.constant 3 : index
    %c0_46 = arith.constant 0 : index
    %c0_47 = arith.constant 0 : index
    %93 = vector.load %arg3[%c3_45, %c0_46, %c0_47] : memref<6x128x128xf32, #tpu.memory_space<vmem>>, vector<1x128x128xf32>
    %94 = vector.shape_cast %93 : vector<1x128x128xf32> to vector<128x128xf32>
    %cst_48 = arith.constant dense<0.000000e+00> : vector<8x128xf32>
    %95 = tpu.matmul %92, %94, %cst_48 {dimension_numbers = #tpu.dot_dimension_numbers<[1], [0], [0], [1], [0, 0, 1, 1], [], []>} : vector<8x128xf32>, vector<128x128xf32>, vector<8x128xf32> -> vector<8x128xf32>
    %c9 = arith.constant 9 : index
    %c0_49 = arith.constant 0 : index
    %96 = vector.load %arg2[%c9, %c0_49] : memref<16x128xf32, #tpu.memory_space<vmem>>, vector<1x128xf32>
    %97 = vector.broadcast %96 : vector<1x128xf32> to vector<8x128xf32>
    %98 = arith.addf %95, %97 : vector<8x128xf32>
    %c10 = arith.constant 10 : index
    %c0_50 = arith.constant 0 : index
    %99 = vector.load %arg2[%c10, %c0_50] : memref<16x128xf32, #tpu.memory_space<vmem>>, vector<1x128xf32>
    %c11 = arith.constant 11 : index
    %c0_51 = arith.constant 0 : index
    %100 = vector.load %arg2[%c11, %c0_51] : memref<16x128xf32, #tpu.memory_space<vmem>>, vector<1x128xf32>
    %cst_52 = arith.constant dense<0.000000e+00> : vector<8x128xf32>
    %101 = tpu.matmul %98, %2, %cst_52 {dimension_numbers = #tpu.dot_dimension_numbers<[1], [0], [0], [1], [0, 0, 1, 1], [], []>} : vector<8x128xf32>, vector<128x128xf32>, vector<8x128xf32> -> vector<8x128xf32>
    %102 = arith.subf %98, %101 : vector<8x128xf32>
    %103 = arith.mulf %102, %102 : vector<8x128xf32>
    %cst_53 = arith.constant dense<0.000000e+00> : vector<8x128xf32>
    %104 = tpu.matmul %103, %2, %cst_53 {dimension_numbers = #tpu.dot_dimension_numbers<[1], [0], [0], [1], [0, 0, 1, 1], [], []>} : vector<8x128xf32>, vector<128x128xf32>, vector<8x128xf32> -> vector<8x128xf32>
    %cst_54 = arith.constant 9.99999974E-6 : f32
    %105 = vector.broadcast %cst_54 : f32 to vector<8x128xf32>
    %106 = arith.addf %104, %105 : vector<8x128xf32>
    %107 = math.rsqrt %106 : vector<8x128xf32>
    %108 = arith.mulf %102, %107 : vector<8x128xf32>
    %109 = vector.broadcast %99 : vector<1x128xf32> to vector<8x128xf32>
    %110 = arith.mulf %108, %109 : vector<8x128xf32>
    %111 = vector.broadcast %100 : vector<1x128xf32> to vector<8x128xf32>
    %112 = arith.addf %110, %111 : vector<8x128xf32>
    %cst_55 = arith.constant 5.000000e-01 : f32
    %113 = vector.broadcast %cst_55 : f32 to vector<8x128xf32>
    %114 = arith.mulf %113, %112 : vector<8x128xf32>
    %115 = math.tanh %114 : vector<8x128xf32>
    %cst_56 = arith.constant 1.000000e+00 : f32
    %116 = vector.broadcast %cst_56 : f32 to vector<8x128xf32>
    %117 = arith.addf %115, %116 : vector<8x128xf32>
    %cst_57 = arith.constant 5.000000e-01 : f32
    %118 = vector.broadcast %cst_57 : f32 to vector<8x128xf32>
    %119 = arith.mulf %118, %117 : vector<8x128xf32>
    %120 = arith.mulf %112, %119 : vector<8x128xf32>
    %121 = arith.addf %92, %120 : vector<8x128xf32>
    %cst_58 = arith.constant 0.707106769 : f32
    %122 = vector.broadcast %cst_58 : f32 to vector<8x128xf32>
    %123 = arith.mulf %121, %122 : vector<8x128xf32>
    %124 = arith.addf %123, %30 : vector<8x128xf32>
    %cst_59 = arith.constant 0.707106769 : f32
    %125 = vector.broadcast %cst_59 : f32 to vector<8x128xf32>
    %126 = arith.mulf %124, %125 : vector<8x128xf32>
    %c4_60 = arith.constant 4 : index
    %c0_61 = arith.constant 0 : index
    %c0_62 = arith.constant 0 : index
    %127 = vector.load %arg3[%c4_60, %c0_61, %c0_62] : memref<6x128x128xf32, #tpu.memory_space<vmem>>, vector<1x128x128xf32>
    %128 = vector.shape_cast %127 : vector<1x128x128xf32> to vector<128x128xf32>
    %cst_63 = arith.constant dense<0.000000e+00> : vector<8x128xf32>
    %129 = tpu.matmul %126, %128, %cst_63 {dimension_numbers = #tpu.dot_dimension_numbers<[1], [0], [0], [1], [0, 0, 1, 1], [], []>} : vector<8x128xf32>, vector<128x128xf32>, vector<8x128xf32> -> vector<8x128xf32>
    %c12 = arith.constant 12 : index
    %c0_64 = arith.constant 0 : index
    %130 = vector.load %arg2[%c12, %c0_64] : memref<16x128xf32, #tpu.memory_space<vmem>>, vector<1x128xf32>
    %131 = vector.broadcast %130 : vector<1x128xf32> to vector<8x128xf32>
    %132 = arith.addf %129, %131 : vector<8x128xf32>
    %c0_65 = arith.constant 0 : index
    %c0_66 = arith.constant 0 : index
    %133 = vector.load %arg4[%c0_65, %c0_66] : memref<8x128xf32, #tpu.memory_space<vmem>>, vector<8x128xf32>
    tpu.vector_store %arg4[%c0_65, %c0_66], %132 {strides = array<i32>} : memref<8x128xf32, #tpu.memory_space<vmem>>, vector<8x128xf32>,
    return
  }
  func.func @transform_0(%arg0: i32) -> (i32, i32) {
    %c0_i32 = arith.constant 0 : i32
    %c0_i32_0 = arith.constant 0 : i32
    return %arg0, %c0_i32 : i32, i32
  }
  func.func @transform_1(%arg0: i32) -> (i32, i32) {
    %c0_i32 = arith.constant 0 : i32
    %c0_i32_0 = arith.constant 0 : i32
    %c0_i32_1 = arith.constant 0 : i32
    return %c0_i32, %c0_i32_0 : i32, i32
  }
  func.func @transform_2(%arg0: i32) -> (i32, i32, i32) {
    %c0_i32 = arith.constant 0 : i32
    %c0_i32_0 = arith.constant 0 : i32
    %c0_i32_1 = arith.constant 0 : i32
    %c0_i32_2 = arith.constant 0 : i32
    return %c0_i32, %c0_i32_0, %c0_i32_1 : i32, i32, i32
  }
  func.func @transform_3(%arg0: i32) -> (i32, i32) {
    %c0_i32 = arith.constant 0 : i32
    %c0_i32_0 = arith.constant 0 : i32
    return %arg0, %c0_i32 : i32, i32
  }
}

</mosaic_0001>

<bundles_post_ra>
// kernel: tpu_custom_call.1
= control target key start
LH: loop header
LB: loop body
LE: loop exit
PB: predicated region body
PF: predicated region fallthrough
CT: control target
= control target key end

     0   :  { %8 = vsyncpa [#allocation3], 0  ;;  %s2461_s0 = inlined_call_operand.hbm [shape: f32[8,128], index: 0, kind: input, shape index: {}]   ;;  %s2462_s1 = inlined_call_operand.hbm [shape: f32[16,128], index: 1, kind: input, shape index: {}]   ;;  %s2463_s2 = inlined_call_operand.hbm [shape: f32[6,128,128], index: 2, kind: input, shape index: {}]   ;;  %s2464_s3 = inlined_call_operand.hbm [shape: f32[8,128], index: 3, kind: output, shape index: {}]  }
   0x1   :  { %9 = vsyncpa [#allocation6], 0 }
   0x2   :  { %10 = vsyncpa [#allocation4], 0  ;;  %s2003_s12 = smov [#allocation5]  }
   0x3   :  { %s26_s13 = sshll.u32 %s2003_s12, 4  ;;  %s27_s13 = int_to_ptr.vmem [resolvable:$true] %s26_s13 }
   0x4   :  { %s1925_s14 = scalar_lea.vmem %s27_s13, 256  ;;  %p1930_p1 = scmp.lt.s32.totalorder %s27_s13, %s27_s13 }
   0x5   :  { %p1926_p0 = scmp.ne.s32.totalorder %s27_s13, %s1925_s14  ;;  %p1931_p2 = scmp.lt.s32.totalorder %s1925_s14, %s1925_s14 }
   0x7   :  { %p1932_p3 = por %p1931_p2, %p1930_p1 }
   0x9   :  { %p1933_p4 = pnand %p1932_p3, %p1926_p0 }
   0xb   :  { %1936 = shalt.err (!%p1933_p4)
}
   0xc   :  { %s2004_s15 = smov 128   ;;  %s2005_s16 = smov 8  }
   0xd   :  { %32 = dma.hbm_to_vmem [thread:$0]  %s2462_s1, 256, %s27_s13, [#allocation6], %s2004_s15, %s2004_s15, %s2005_s16  }
   0xe   :  { %s2006_s19 = smov [#allocation2]   ;;  %s2007_s21 = smov [#allocation7]  }
   0xf   :  { %s17_s20 = sshll.u32 %s2006_s19, 4  ;;  %s38_s22 = sshll.u32 %s2007_s21, 4  ;;  %s18_s20 = int_to_ptr.vmem [resolvable:$true] %s17_s20  ;;  %s39_s22 = int_to_ptr.vmem [resolvable:$true] %s38_s22 }
  0x10   :  { %s1945_s23 = scalar_lea.vmem %s18_s20, 128  ;;  %p1950_p6 = scmp.lt.s32.totalorder %s18_s20, %s18_s20 }
  0x11   :  { %p1946_p5 = scmp.ne.s32.totalorder %s18_s20, %s1945_s23  ;;  %p1951_p7 = scmp.lt.s32.totalorder %s1945_s23, %s1945_s23 }
  0x13   :  { %p1952_p8 = por %p1951_p7, %p1950_p6 }
  0x15   :  { %p1953_p9 = pnand %p1952_p8, %p1946_p5 }
  0x17   :  { %1956 = shalt.err (!%p1953_p9)
}
  0x18   :  { %20 = dma.hbm_to_vmem [thread:$0]  %s2461_s0, 128, %s18_s20, [#allocation3]  }
  0x19   :  { %s1965_s26 = scalar_lea.vmem %s39_s22, 12288  ;;  %p1970_p11 = scmp.lt.s32.totalorder %s39_s22, %s39_s22 }
  0x1a   :  { %p1966_p10 = scmp.ne.s32.totalorder %s39_s22, %s1965_s26  ;;  %p1971_p12 = scmp.lt.s32.totalorder %s1965_s26, %s1965_s26 }
  0x1c   :  { %p1972_p13 = por %p1971_p12, %p1970_p11 }
  0x1e   :  { %p1973_p0 = pnand %p1972_p13, %p1966_p10 }
  0x20   :  { %1976 = shalt.err (!%p1973_p0)
}
  0x21   :  { %44 = dma.hbm_to_vmem [thread:$0]  %s2463_s2, 12288, %s39_s22, [#allocation6], %s2004_s15, %s2004_s15, %s2005_s16  }
  0x22   :  { %1997 = dma.done.wait [#allocation3], 128  }
  0x23   :  { %1998 = vsyncadd [#allocation3], 4294967168 }
  0x24   :  { %1999 = dma.done.wait [#allocation6], 12544  }
  0x25   :  { %2000 = vsyncadd [#allocation6], 4294954752  ;;  %v2008_v0 = vmov 0.0   ;;  %vm2009_vm0 = vmmov 0   ;;  %v87_v1 = vld [vmem:[#allocation7 + $0x78] sm:$0xff]  ;;  %v86_v2 = vld [vmem:[#allocation7 + $0x70] sm:$0xff] }
  0x26   :  { %1434 = vmatprep.subr.mxu0 %v2008_v0  ;;  %1466 = vmatprep.mubr.msk.f32.mxu0 %vm2009_vm0, %v2008_v0  ;;  %v85_v3 = vld [vmem:[#allocation7 + $0x68] sm:$0xff]  ;;  %v84_v4 = vld [vmem:[#allocation7 + $0x60] sm:$0xff]  ;;  %v2048_v5 = vld [vmem:[#allocation7 + $0x2f8] sm:$0xff]  ;;  %s2010_s0 = smov [#allocation8]  }
  0x27   :  { %1469 = vmatprep.subr.mxu1 %v2008_v0  ;;  %1501 = vmatprep.mubr.msk.f32.mxu1 %vm2009_vm0, %v2008_v0  ;;  %v83_v6 = vld [vmem:[#allocation7 + $0x58] sm:$0xff]  ;;  %v2052_v7 = vld [vmem:[#allocation7 + $0x2f0] sm:$0xff]  ;;  %v2055_v8 = vld [vmem:[#allocation7 + $0x2e8] sm:$0xff]  ;;  %s1190_s2 = sshll.u32 %s2010_s0, 4  ;;  %s1191_s2 = int_to_ptr.vmem [resolvable:$true] %s1190_s2 }
  0x28   :  { %1435 = vmatpush3.msra.mxu0 %v87_v1  ;;  %1470 = vmatpush3.msra.mxu1 %v2048_v5  ;;  %v82_v9 = vld [vmem:[#allocation7 + $0x50] sm:$0xff]  ;;  %v2060_v10 = vld [vmem:[#allocation7 + $0x2e0] sm:$0xff]  ;;  %v81_v11 = vld [vmem:[#allocation7 + $0x48] sm:$0xff]  ;;  %s1977_s28 = scalar_lea.vmem %s1191_s2, 128  ;;  %p1982_p2 = scmp.lt.s32.totalorder %s1191_s2, %s1191_s2 }
  0x29   :  { %1436 = vmatprep.subr.mxu0 %v2008_v0  ;;  %1471 = vmatprep.subr.mxu1 %v2008_v0  ;;  %v2065_v12 = vld [vmem:[#allocation7 + $0x2d8] sm:$0xff]  ;;  %v80_v13 = vld [vmem:[#allocation7 + $0x40] sm:$0xff]  ;;  %v2070_v14 = vld [vmem:[#allocation7 + $0x2d0] sm:$0xff]  ;;  %p1978_p1 = scmp.ne.s32.totalorder %s1191_s2, %s1977_s28  ;;  %p1983_p3 = scmp.lt.s32.totalorder %s1977_s28, %s1977_s28 }
  0x2a   :  { %1437 = vmatpush3.msra.mxu0 %v86_v2  ;;  %1472 = vmatpush3.msra.mxu1 %v2052_v7  ;;  %v79_v15 = vld [vmem:[#allocation7 + $0x38] sm:$0xff]  ;;  %v2075_v16 = vld [vmem:[#allocation7 + $0x2c8] sm:$0xff]  ;;  %v78_v17 = vld [vmem:[#allocation7 + $0x30] sm:$0xff] }
  0x2b   :  { %1438 = vmatprep.subr.mxu0 %v2008_v0  ;;  %1473 = vmatprep.subr.mxu1 %v2008_v0  ;;  %v2080_v18 = vld [vmem:[#allocation7 + $0x2c0] sm:$0xff]  ;;  %v77_v19 = vld [vmem:[#allocation7 + $0x28] sm:$0xff]  ;;  %v2085_v20 = vld [vmem:[#allocation7 + $0x2b8] sm:$0xff]  ;;  %p1984_p4 = por %p1983_p3, %p1982_p2 }
  0x2c   :  { %1439 = vmatpush3.msra.mxu0 %v85_v3  ;;  %1474 = vmatpush3.msra.mxu1 %v2055_v8  ;;  %v76_v21 = vld [vmem:[#allocation7 + $0x20] sm:$0xff]  ;;  %v2090_v22 = vld [vmem:[#allocation7 + $0x2b0] sm:$0xff]  ;;  %v75_v23 = vld [vmem:[#allocation7 + $0x18] sm:$0xff] }
  0x2d   :  { %1440 = vmatprep.subr.mxu0 %v2008_v0  ;;  %1475 = vmatprep.subr.mxu1 %v2008_v0  ;;  %v2095_v24 = vld [vmem:[#allocation7 + $0x2a8] sm:$0xff]  ;;  %v74_v25 = vld [vmem:[#allocation7 + $0x10] sm:$0xff]  ;;  %v2100_v26 = vld [vmem:[#allocation7 + $0x2a0] sm:$0xff]  ;;  %p1985_p5 = pnand %p1984_p4, %p1978_p1 }
  0x2e   :  { %1441 = vmatpush3.msra.mxu0 %v84_v4  ;;  %1476 = vmatpush3.msra.mxu1 %v2060_v10  ;;  %v73_v27 = vld [vmem:[#allocation7 + $0x8] sm:$0xff]  ;;  %v2105_v28 = vld [vmem:[#allocation7 + $0x298] sm:$0xff]  ;;  %v72_v29 = vld [vmem:[#allocation7] sm:$0xff] }
  0x2f   :  { %1442 = vmatprep.subr.mxu0 %v2008_v0  ;;  %1477 = vmatprep.subr.mxu1 %v2008_v0  ;;  %v54_v30 = vld [vmem:[#allocation2] sm:$0xff]  ;;  %v2110_v31 = vld [vmem:[#allocation7 + $0x290] sm:$0xff]  ;;  %v2153_v33 = vld [vmem:[#allocation7 + $0x280] sm:$0xff] }
  0x30   :  { %1443 = vmatpush3.msra.mxu0 %v83_v6  ;;  %1478 = vmatpush3.msra.mxu1 %v2065_v12  ;;  %v2148_v32 = vld [vmem:[#allocation7 + $0x288] sm:$0xff]  ;;  %v1200_v34 = vld [vmem:[#allocation5] ss:$0 sm:$0xff]  ;;  %v340_v42 = vld [vmem:[#allocation7 + $0xf8] sm:$0xff] }
  0x31   :  { %1444 = vmatprep.subr.mxu0 %v2008_v0  ;;  %1479 = vmatprep.subr.mxu1 %v2008_v0  ;;  %v339_v43 = vld [vmem:[#allocation7 + $0xf0] sm:$0xff]  ;;  %v338_v44 = vld [vmem:[#allocation7 + $0xe8] sm:$0xff]  ;;  %v337_v45 = vld [vmem:[#allocation7 + $0xe0] sm:$0xff] }
  0x32   :  { %1445 = vmatpush3.msra.mxu0 %v82_v9  ;;  %1480 = vmatpush3.msra.mxu1 %v2070_v14  ;;  %v336_v46 = vld [vmem:[#allocation7 + $0xd8] sm:$0xff]  ;;  %v335_v47 = vld [vmem:[#allocation7 + $0xd0] sm:$0xff]  ;;  %v334_v48 = vld [vmem:[#allocation7 + $0xc8] sm:$0xff] }
  0x33   :  { %1446 = vmatprep.subr.mxu0 %v2008_v0  ;;  %1481 = vmatprep.subr.mxu1 %v2008_v0  ;;  %v333_v49 = vld [vmem:[#allocation7 + $0xc0] sm:$0xff]  ;;  %v332_v50 = vld [vmem:[#allocation7 + $0xb8] sm:$0xff]  ;;  %v331_v51 = vld [vmem:[#allocation7 + $0xb0] sm:$0xff] }
  0x34   :  { %1447 = vmatpush3.msra.mxu0 %v81_v11  ;;  %1482 = vmatpush3.msra.mxu1 %v2075_v16  ;;  %v330_v52 = vld [vmem:[#allocation7 + $0xa8] sm:$0xff]  ;;  %v329_v53 = vld [vmem:[#allocation7 + $0xa0] sm:$0xff]  ;;  %v328_v54 = vld [vmem:[#allocation7 + $0x98] sm:$0xff] }
  0x35   :  { %1448 = vmatprep.subr.mxu0 %v2008_v0  ;;  %1483 = vmatprep.subr.mxu1 %v2008_v0  ;;  %v327_v55 = vld [vmem:[#allocation7 + $0x90] sm:$0xff]  ;;  %v326_v56 = vld [vmem:[#allocation7 + $0x88] sm:$0xff]  ;;  %v325_v57 = vld [vmem:[#allocation7 + $0x80] sm:$0xff] }
  0x36   :  { %1449 = vmatpush3.msra.mxu0 %v80_v13  ;;  %1484 = vmatpush3.msra.mxu1 %v2080_v18  ;;  %v1201_v62 = vld [vmem:[#allocation5 + $0x1] ss:$0 sm:$0xff]  ;;  %v1202_v1 = vld [vmem:[#allocation5 + $0x2] ss:$0 sm:$0xff] }
  0x37   :  { %1450 = vmatprep.subr.mxu0 %v2008_v0  ;;  %1485 = vmatprep.subr.mxu1 %v2008_v0 }
  0x38   :  { %1451 = vmatpush3.msra.mxu0 %v79_v15  ;;  %1486 = vmatpush3.msra.mxu1 %v2085_v20  ;;  %v1203_v15 = vld [vmem:[#allocation5 + $0x3] ss:$0 sm:$0xff] }
  0x39   :  { %1452 = vmatprep.subr.mxu0 %v2008_v0  ;;  %1487 = vmatprep.subr.mxu1 %v2008_v0 }
  0x3a   :  { %1453 = vmatpush3.msra.mxu0 %v78_v17  ;;  %1488 = vmatpush3.msra.mxu1 %v2090_v22 }
  0x3b   :  { %1454 = vmatprep.subr.mxu0 %v2008_v0  ;;  %1489 = vmatprep.subr.mxu1 %v2008_v0 }
  0x3c   :  { %1455 = vmatpush3.msra.mxu0 %v77_v19  ;;  %1490 = vmatpush3.msra.mxu1 %v2095_v24 }
  0x3d   :  { %1456 = vmatprep.subr.mxu0 %v2008_v0  ;;  %1491 = vmatprep.subr.mxu1 %v2008_v0 }
  0x3e   :  { %1457 = vmatpush3.msra.mxu0 %v76_v21  ;;  %1492 = vmatpush3.msra.mxu1 %v2100_v26 }
  0x3f   :  { %1458 = vmatprep.subr.mxu0 %v2008_v0  ;;  %1493 = vmatprep.subr.mxu1 %v2008_v0 }
  0x40   :  { %1459 = vmatpush3.msra.mxu0 %v75_v23  ;;  %1494 = vmatpush3.msra.mxu1 %v2105_v28 }
  0x41   :  { %1460 = vmatprep.subr.mxu0 %v2008_v0  ;;  %1495 = vmatprep.subr.mxu1 %v2008_v0 }
  0x42   :  { %1461 = vmatpush3.msra.mxu0 %v74_v25  ;;  %1496 = vmatpush3.msra.mxu1 %v2110_v31 }
  0x43   :  { %1462 = vmatprep.subr.mxu0 %v2008_v0  ;;  %1497 = vmatprep.subr.mxu1 %v2008_v0 }
  0x44   :  { %1463 = vmatpush3.msra.mxu0 %v73_v27  ;;  %1498 = vmatpush3.msra.mxu1 %v2148_v32 }
  0x45   :  { %1464 = vmatprep.subr.mxu0 %v2008_v0  ;;  %1499 = vmatprep.subr.mxu1 %v2008_v0 }
  0x46   :  { %1465 = vmatpush3.msra.mxu0 %v72_v29  ;;  %1500 = vmatpush3.msra.mxu1 %v2153_v33 }
  0x47   :  { %1467 = vmatmul.mubr.f32.vlgmr.msra.gmra.mxu0 %v54_v30  ;;  %1504 = vmatprep.subr.mxu0 %v2008_v0  ;;  %v595_v30 = vld [vmem:[#allocation7 + $0x178] sm:$0xff] }
  0x48   :  { %1505 = vmatpush3.msra.mxu0 %v2048_v5  ;;  %1536 = vmatprep.mubr.msk.f32.mxu0 %vm2009_vm0, %v2008_v0 }
  0x49   :  { %1506 = vmatprep.subr.mxu0 %v2008_v0  ;;  %1539 = vmatprep.subr.mxu1 %v2008_v0 }
  0x4a   :  { %1507 = vmatpush3.msra.mxu0 %v2052_v7 }
  0x4b   :  { %1508 = vmatprep.subr.mxu0 %v2008_v0 }
  0x4c   :  { %1509 = vmatpush3.msra.mxu0 %v2055_v8 }
  0x4d   :  { %1510 = vmatprep.subr.mxu0 %v2008_v0 }
  0x4e   :  { %1511 = vmatpush3.msra.mxu0 %v2060_v10 }
  0x4f   :  { %1512 = vmatprep.subr.mxu0 %v2008_v0 }
  0x50   :  { %1513 = vmatpush3.msra.mxu0 %v2065_v12 }
  0x51   :  { %1514 = vmatprep.subr.mxu0 %v2008_v0 }
  0x52   :  { %1515 = vmatpush3.msra.mxu0 %v2070_v14 }
  0x53   :  { %1516 = vmatprep.subr.mxu0 %v2008_v0 }
  0x54   :  { %1517 = vmatpush3.msra.mxu0 %v2075_v16 }
  0x55   :  { %1518 = vmatprep.subr.mxu0 %v2008_v0 }
  0x56   :  { %1519 = vmatpush3.msra.mxu0 %v2080_v18 }
  0x57   :  { %1520 = vmatprep.subr.mxu0 %v2008_v0 }
  0x58   :  { %1521 = vmatpush3.msra.mxu0 %v2085_v20 }
  0x59   :  { %1522 = vmatprep.subr.mxu0 %v2008_v0 }
  0x5a   :  { %1523 = vmatpush3.msra.mxu0 %v2090_v22 }
  0x5b   :  { %1524 = vmatprep.subr.mxu0 %v2008_v0 }
  0x5c   :  { %1525 = vmatpush3.msra.mxu0 %v2095_v24 }
  0x5d   :  { %1526 = vmatprep.subr.mxu0 %v2008_v0 }
  0x5e   :  { %1527 = vmatpush3.msra.mxu0 %v2100_v26 }
  0x5f   :  { %1528 = vmatprep.subr.mxu0 %v2008_v0 }
  0x60   :  { %1529 = vmatpush3.msra.mxu0 %v2105_v28 }
  0x61   :  { %1530 = vmatprep.subr.mxu0 %v2008_v0 }
  0x62   :  { %1531 = vmatpush3.msra.mxu0 %v2110_v31 }
  0x63   :  { %1532 = vmatprep.subr.mxu0 %v2008_v0 }
  0x64   :  { %1533 = vmatpush3.msra.mxu0 %v2148_v32 }
  0x65   :  { %1534 = vmatprep.subr.mxu0 %v2008_v0 }
  0x66   :  { %1535 = vmatpush3.msra.mxu0 %v2153_v33 }
  0x67   :  { %1574 = vmatprep.subr.mxu0 %v2008_v0 }
 0x107   :  { %v159_v35 = vpop.f32.mrf.mxu0 }
 0x108   :  { %v160_v36 = vadd.f32 %v1200_v34, %v159_v35  ;;  %v594_v34 = vld [vmem:[#allocation7 + $0x170] sm:$0xff]  ;;  %v593_v35 = vld [vmem:[#allocation7 + $0x168] sm:$0xff] }
 0x109   :  { %v1468_v37 = vpop.f32.mrf.mxu0 }
 0x10a   :  { %1502 = vmatmul.mubr.f32.vlgmr.msra.gmra.mxu1 %v160_v36  ;;  %v591_v37 = vld [vmem:[#allocation7 + $0x158] sm:$0xff] }
 0x10b   :  { %1571 = vmatprep.mubr.msk.f32.mxu1 %vm2009_vm0, %v2008_v0  ;;  %1540 = vmatpush3.msra.mxu1 %v340_v42  ;;  %v586_v42 = vld [vmem:[#allocation7 + $0x130] sm:$0xff] }
 0x10c   :  { %1541 = vmatprep.subr.mxu1 %v2008_v0 }
 0x10d   :  { %1542 = vmatpush3.msra.mxu1 %v339_v43  ;;  %v585_v43 = vld [vmem:[#allocation7 + $0x128] sm:$0xff] }
 0x10e   :  { %1543 = vmatprep.subr.mxu1 %v2008_v0 }
 0x10f   :  { %1544 = vmatpush3.msra.mxu1 %v338_v44  ;;  %v584_v44 = vld [vmem:[#allocation7 + $0x120] sm:$0xff] }
 0x110   :  { %1545 = vmatprep.subr.mxu1 %v2008_v0 }
 0x111   :  { %1546 = vmatpush3.msra.mxu1 %v337_v45  ;;  %v583_v45 = vld [vmem:[#allocation7 + $0x118] sm:$0xff] }
 0x112   :  { %1547 = vmatprep.subr.mxu1 %v2008_v0 }
 0x113   :  { %1548 = vmatpush3.msra.mxu1 %v336_v46  ;;  %v582_v46 = vld [vmem:[#allocation7 + $0x110] sm:$0xff] }
 0x114   :  { %1549 = vmatprep.subr.mxu1 %v2008_v0 }
 0x115   :  { %1550 = vmatpush3.msra.mxu1 %v335_v47  ;;  %v581_v47 = vld [vmem:[#allocation7 + $0x108] sm:$0xff] }
 0x116   :  { %1551 = vmatprep.subr.mxu1 %v2008_v0 }
 0x117   :  { %1552 = vmatpush3.msra.mxu1 %v334_v48  ;;  %v580_v48 = vld [vmem:[#allocation7 + $0x100] sm:$0xff] }
 0x118   :  { %1553 = vmatprep.subr.mxu1 %v2008_v0 }
 0x119   :  { %1554 = vmatpush3.msra.mxu1 %v333_v49 }
 0x11a   :  { %1555 = vmatprep.subr.mxu1 %v2008_v0 }
 0x11b   :  { %1556 = vmatpush3.msra.mxu1 %v332_v50 }
 0x11c   :  { %1557 = vmatprep.subr.mxu1 %v2008_v0 }
 0x11d   :  { %1558 = vmatpush3.msra.mxu1 %v331_v51 }
 0x11e   :  { %1559 = vmatprep.subr.mxu1 %v2008_v0 }
 0x11f   :  { %1560 = vmatpush3.msra.mxu1 %v330_v52 }
 0x120   :  { %1561 = vmatprep.subr.mxu1 %v2008_v0 }
 0x121   :  { %1562 = vmatpush3.msra.mxu1 %v329_v53  ;;  %v1204_v53 = vld [vmem:[#allocation5 + $0x4] ss:$0 sm:$0xff] }
 0x122   :  { %1563 = vmatprep.subr.mxu1 %v2008_v0 }
 0x123   :  { %1564 = vmatpush3.msra.mxu1 %v328_v54 }
 0x124   :  { %1565 = vmatprep.subr.mxu1 %v2008_v0 }
 0x125   :  { %1566 = vmatpush3.msra.mxu1 %v327_v55  ;;  %v1205_v55 = vld [vmem:[#allocation5 + $0x5] ss:$0 sm:$0xff] }
 0x126   :  { %1567 = vmatprep.subr.mxu1 %v2008_v0 }
 0x127   :  { %1568 = vmatpush3.msra.mxu1 %v326_v56 }
 0x128   :  { %1569 = vmatprep.subr.mxu1 %v2008_v0 }
 0x129   :  { %1570 = vmatpush3.msra.mxu1 %v325_v57 }
 0x12a   :  { %1609 = vmatprep.subr.mxu1 %v2008_v0 }
 0x1ca   :  { %v231_v38 = vpop.f32.mrf.mxu1 }
 0x1cb   :  { %v2162_v39 = vsub.f32 %v160_v36, %v231_v38  ;;  %v592_v36 = vld [vmem:[#allocation7 + $0x160] sm:$0xff]  ;;  %v590_v38 = vld [vmem:[#allocation7 + $0x150] sm:$0xff] }
 0x1cc   :  { %v1503_v40 = vpop.f32.mrf.mxu1 }
 0x1cd   :  { %v236_v41 = vmul.f32 %v2162_v39, %v2162_v39  ;;  %v588_v40 = vld [vmem:[#allocation7 + $0x140] sm:$0xff] }
 0x1cf   :  { %1537 = vmatmul.mubr.f32.vlgmr.msra.gmra.mxu0 %v236_v41  ;;  %v587_v41 = vld [vmem:[#allocation7 + $0x138] sm:$0xff] }
 0x1d0   :  { %1575 = vmatpush3.msra.mxu0 %v2048_v5  ;;  %1606 = vmatprep.mubr.msk.f32.mxu0 %vm2009_vm0, %v2008_v0 }
 0x1d1   :  { %1576 = vmatprep.subr.mxu0 %v2008_v0 }
 0x1d2   :  { %1577 = vmatpush3.msra.mxu0 %v2052_v7 }
 0x1d3   :  { %1578 = vmatprep.subr.mxu0 %v2008_v0 }
 0x1d4   :  { %1579 = vmatpush3.msra.mxu0 %v2055_v8 }
 0x1d5   :  { %1580 = vmatprep.subr.mxu0 %v2008_v0 }
 0x1d6   :  { %1581 = vmatpush3.msra.mxu0 %v2060_v10 }
 0x1d7   :  { %1582 = vmatprep.subr.mxu0 %v2008_v0 }
 0x1d8   :  { %1583 = vmatpush3.msra.mxu0 %v2065_v12 }
 0x1d9   :  { %1584 = vmatprep.subr.mxu0 %v2008_v0 }
 0x1da   :  { %1585 = vmatpush3.msra.mxu0 %v2070_v14 }
 0x1db   :  { %1586 = vmatprep.subr.mxu0 %v2008_v0 }
 0x1dc   :  { %1587 = vmatpush3.msra.mxu0 %v2075_v16 }
 0x1dd   :  { %1588 = vmatprep.subr.mxu0 %v2008_v0 }
 0x1de   :  { %1589 = vmatpush3.msra.mxu0 %v2080_v18 }
 0x1df   :  { %1590 = vmatprep.subr.mxu0 %v2008_v0 }
 0x1e0   :  { %1591 = vmatpush3.msra.mxu0 %v2085_v20 }
 0x1e1   :  { %1592 = vmatprep.subr.mxu0 %v2008_v0 }
 0x1e2   :  { %1593 = vmatpush3.msra.mxu0 %v2090_v22 }
 0x1e3   :  { %1594 = vmatprep.subr.mxu0 %v2008_v0 }
 0x1e4   :  { %1595 = vmatpush3.msra.mxu0 %v2095_v24 }
 0x1e5   :  { %1596 = vmatprep.subr.mxu0 %v2008_v0 }
 0x1e6   :  { %1597 = vmatpush3.msra.mxu0 %v2100_v26 }
 0x1e7   :  { %1598 = vmatprep.subr.mxu0 %v2008_v0 }
 0x1e8   :  { %1599 = vmatpush3.msra.mxu0 %v2105_v28 }
 0x1e9   :  { %1600 = vmatprep.subr.mxu0 %v2008_v0 }
 0x1ea   :  { %1601 = vmatpush3.msra.mxu0 %v2110_v31 }
 0x1eb   :  { %1602 = vmatprep.subr.mxu0 %v2008_v0 }
 0x1ec   :  { %1603 = vmatpush3.msra.mxu0 %v2148_v32 }
 0x1ed   :  { %1604 = vmatprep.subr.mxu0 %v2008_v0 }
 0x1ee   :  { %1605 = vmatpush3.msra.mxu0 %v2153_v33 }
 0x1ef   :  { %1644 = vmatprep.subr.mxu0 %v2008_v0 }
 0x28f   :  { %v303_v58 = vpop.f32.mrf.mxu0 }
 0x290   :  { %v304_v59 = vadd.f32 1e-05, %v303_v58 }
 0x291   :  { %v1538_v60 = vpop.f32.mrf.mxu0 }
 0x292   :  { %1897 = vrsqrt.f32 %v304_v59 }
 0x29f   :  { %v1898_v61 = vpop.eup %1897 }
 0x2a0   :  { %v308_v63 = vmul.f32 %v1898_v61, %v2162_v39  ;;  %v589_v39 = vld [vmem:[#allocation7 + $0x148] sm:$0xff] }
 0x2a2   :  { %v313_v2 = vmul.f32 %v1201_v62, %v308_v63 }
 0x2a4   :  { %v318_v3 = vadd.f32 %v1202_v1, %v313_v2  ;;  %v1206_v2 = vld [vmem:[#allocation5 + $0x6] ss:$0 sm:$0xff] }
 0x2a6   :  { %v319_v4 = vmul.f32 0.5, %v318_v3 }
 0x2a8   :  { %1899 = vtanh.f32 %v319_v4 }
 0x2b5   :  { %v1900_v6 = vpop.eup %1899 }
 0x2b6   :  { %v321_v9 = vadd.f32 1.0, %v1900_v6 }
 0x2b8   :  { %v322_v11 = vmul.f32 0.5, %v321_v9 }
 0x2ba   :  { %v2217_v13 = vmul.f32 %v322_v11, %v318_v3 }
 0x2bc   :  { %1572 = vmatmul.mubr.f32.vlgmr.msra.gmra.mxu1 %v2217_v13 }
 0x2bd   :  { %1610 = vmatpush3.msra.mxu1 %v2048_v5  ;;  %1641 = vmatprep.mubr.msk.f32.mxu1 %vm2009_vm0, %v2008_v0 }
 0x2be   :  { %1611 = vmatprep.subr.mxu1 %v2008_v0 }
 0x2bf   :  { %1612 = vmatpush3.msra.mxu1 %v2052_v7 }
 0x2c0   :  { %1613 = vmatprep.subr.mxu1 %v2008_v0 }
 0x2c1   :  { %1614 = vmatpush3.msra.mxu1 %v2055_v8 }
 0x2c2   :  { %1615 = vmatprep.subr.mxu1 %v2008_v0 }
 0x2c3   :  { %1616 = vmatpush3.msra.mxu1 %v2060_v10 }
 0x2c4   :  { %1617 = vmatprep.subr.mxu1 %v2008_v0 }
 0x2c5   :  { %1618 = vmatpush3.msra.mxu1 %v2065_v12 }
 0x2c6   :  { %1619 = vmatprep.subr.mxu1 %v2008_v0 }
 0x2c7   :  { %1620 = vmatpush3.msra.mxu1 %v2070_v14 }
 0x2c8   :  { %1621 = vmatprep.subr.mxu1 %v2008_v0 }
 0x2c9   :  { %1622 = vmatpush3.msra.mxu1 %v2075_v16 }
 0x2ca   :  { %1623 = vmatprep.subr.mxu1 %v2008_v0 }
 0x2cb   :  { %1624 = vmatpush3.msra.mxu1 %v2080_v18 }
 0x2cc   :  { %1625 = vmatprep.subr.mxu1 %v2008_v0 }
 0x2cd   :  { %1626 = vmatpush3.msra.mxu1 %v2085_v20 }
 0x2ce   :  { %1627 = vmatprep.subr.mxu1 %v2008_v0 }
 0x2cf   :  { %1628 = vmatpush3.msra.mxu1 %v2090_v22 }
 0x2d0   :  { %1629 = vmatprep.subr.mxu1 %v2008_v0 }
 0x2d1   :  { %1630 = vmatpush3.msra.mxu1 %v2095_v24 }
 0x2d2   :  { %1631 = vmatprep.subr.mxu1 %v2008_v0 }
 0x2d3   :  { %1632 = vmatpush3.msra.mxu1 %v2100_v26 }
 0x2d4   :  { %1633 = vmatprep.subr.mxu1 %v2008_v0 }
 0x2d5   :  { %1634 = vmatpush3.msra.mxu1 %v2105_v28 }
 0x2d6   :  { %1635 = vmatprep.subr.mxu1 %v2008_v0 }
 0x2d7   :  { %1636 = vmatpush3.msra.mxu1 %v2110_v31 }
 0x2d8   :  { %1637 = vmatprep.subr.mxu1 %v2008_v0 }
 0x2d9   :  { %1638 = vmatpush3.msra.mxu1 %v2148_v32 }
 0x2da   :  { %1639 = vmatprep.subr.mxu1 %v2008_v0 }
 0x2db   :  { %1640 = vmatpush3.msra.mxu1 %v2153_v33 }
 0x2dc   :  { %1679 = vmatprep.subr.mxu1 %v2008_v0 }
 0x37c   :  { %v412_v17 = vpop.f32.mrf.mxu1 }
 0x37d   :  { %v413_v19 = vadd.f32 %v1203_v15, %v412_v17 }
 0x37e   :  { %v1573_v21 = vpop.f32.mrf.mxu1 }
 0x37f   :  { %1607 = vmatmul.mubr.f32.vlgmr.msra.gmra.mxu0 %v413_v19  ;;  %v845_v21 = vld [vmem:[#allocation7 + $0x1d0] sm:$0xff] }
 0x380   :  { %1676 = vmatprep.mubr.msk.f32.mxu0 %vm2009_vm0, %v2008_v0  ;;  %1645 = vmatpush3.msra.mxu0 %v595_v30  ;;  %v840_v30 = vld [vmem:[#allocation7 + $0x1a8] sm:$0xff] }
 0x381   :  { %1646 = vmatprep.subr.mxu0 %v2008_v0 }
 0x382   :  { %1647 = vmatpush3.msra.mxu0 %v594_v34  ;;  %v839_v34 = vld [vmem:[#allocation7 + $0x1a0] sm:$0xff] }
 0x383   :  { %1648 = vmatprep.subr.mxu0 %v2008_v0 }
 0x384   :  { %1649 = vmatpush3.msra.mxu0 %v593_v35  ;;  %v838_v35 = vld [vmem:[#allocation7 + $0x198] sm:$0xff] }
 0x385   :  { %1650 = vmatprep.subr.mxu0 %v2008_v0 }
 0x386   :  { %1651 = vmatpush3.msra.mxu0 %v592_v36  ;;  %v837_v36 = vld [vmem:[#allocation7 + $0x190] sm:$0xff] }
 0x387   :  { %1652 = vmatprep.subr.mxu0 %v2008_v0 }
 0x388   :  { %1653 = vmatpush3.msra.mxu0 %v591_v37  ;;  %v836_v37 = vld [vmem:[#allocation7 + $0x188] sm:$0xff] }
 0x389   :  { %1654 = vmatprep.subr.mxu0 %v2008_v0 }
 0x38a   :  { %1655 = vmatpush3.msra.mxu0 %v590_v38  ;;  %v835_v38 = vld [vmem:[#allocation7 + $0x180] sm:$0xff] }
 0x38b   :  { %1656 = vmatprep.subr.mxu0 %v2008_v0 }
 0x38c   :  { %1657 = vmatpush3.msra.mxu0 %v589_v39 }
 0x38d   :  { %1658 = vmatprep.subr.mxu0 %v2008_v0 }
 0x38e   :  { %1659 = vmatpush3.msra.mxu0 %v588_v40 }
 0x38f   :  { %1660 = vmatprep.subr.mxu0 %v2008_v0 }
 0x390   :  { %1661 = vmatpush3.msra.mxu0 %v587_v41 }
 0x391   :  { %1662 = vmatprep.subr.mxu0 %v2008_v0 }
 0x392   :  { %1663 = vmatpush3.msra.mxu0 %v586_v42 }
 0x393   :  { %1664 = vmatprep.subr.mxu0 %v2008_v0 }
 0x394   :  { %1665 = vmatpush3.msra.mxu0 %v585_v43  ;;  %v1207_v43 = vld [vmem:[#allocation5 + $0x7] ss:$0 sm:$0xff] }
 0x395   :  { %1666 = vmatprep.subr.mxu0 %v2008_v0 }
 0x396   :  { %1667 = vmatpush3.msra.mxu0 %v584_v44 }
 0x397   :  { %1668 = vmatprep.subr.mxu0 %v2008_v0 }
 0x398   :  { %1669 = vmatpush3.msra.mxu0 %v583_v45  ;;  %v1208_v45 = vld [vmem:[#allocation5 + $0x8] ss:$0 sm:$0xff] }
 0x399   :  { %1670 = vmatprep.subr.mxu0 %v2008_v0 }
 0x39a   :  { %1671 = vmatpush3.msra.mxu0 %v582_v46 }
 0x39b   :  { %1672 = vmatprep.subr.mxu0 %v2008_v0 }
 0x39c   :  { %1673 = vmatpush3.msra.mxu0 %v581_v47 }
 0x39d   :  { %1674 = vmatprep.subr.mxu0 %v2008_v0 }
 0x39e   :  { %1675 = vmatpush3.msra.mxu0 %v580_v48 }
 0x39f   :  { %1714 = vmatprep.subr.mxu0 %v2008_v0 }
 0x43f   :  { %v484_v23 = vpop.f32.mrf.mxu0 }
 0x440   :  { %v2256_v25 = vsub.f32 %v413_v19, %v484_v23  ;;  %v846_v19 = vld [vmem:[#allocation7 + $0x1d8] sm:$0xff]  ;;  %v844_v23 = vld [vmem:[#allocation7 + $0x1c8] sm:$0xff] }
 0x441   :  { %v1608_v27 = vpop.f32.mrf.mxu0 }
 0x442   :  { %v489_v29 = vmul.f32 %v2256_v25, %v2256_v25  ;;  %v842_v27 = vld [vmem:[#allocation7 + $0x1b8] sm:$0xff] }
 0x444   :  { %1642 = vmatmul.mubr.f32.vlgmr.msra.gmra.mxu1 %v489_v29  ;;  %v841_v29 = vld [vmem:[#allocation7 + $0x1b0] sm:$0xff] }
 0x445   :  { %1680 = vmatpush3.msra.mxu1 %v2048_v5  ;;  %1711 = vmatprep.mubr.msk.f32.mxu1 %vm2009_vm0, %v2008_v0 }
 0x446   :  { %1681 = vmatprep.subr.mxu1 %v2008_v0 }
 0x447   :  { %1682 = vmatpush3.msra.mxu1 %v2052_v7 }
 0x448   :  { %1683 = vmatprep.subr.mxu1 %v2008_v0 }
 0x449   :  { %1684 = vmatpush3.msra.mxu1 %v2055_v8 }
 0x44a   :  { %1685 = vmatprep.subr.mxu1 %v2008_v0 }
 0x44b   :  { %1686 = vmatpush3.msra.mxu1 %v2060_v10 }
 0x44c   :  { %1687 = vmatprep.subr.mxu1 %v2008_v0 }
 0x44d   :  { %1688 = vmatpush3.msra.mxu1 %v2065_v12 }
 0x44e   :  { %1689 = vmatprep.subr.mxu1 %v2008_v0 }
 0x44f   :  { %1690 = vmatpush3.msra.mxu1 %v2070_v14 }
 0x450   :  { %1691 = vmatprep.subr.mxu1 %v2008_v0 }
 0x451   :  { %1692 = vmatpush3.msra.mxu1 %v2075_v16 }
 0x452   :  { %1693 = vmatprep.subr.mxu1 %v2008_v0 }
 0x453   :  { %1694 = vmatpush3.msra.mxu1 %v2080_v18 }
 0x454   :  { %1695 = vmatprep.subr.mxu1 %v2008_v0 }
 0x455   :  { %1696 = vmatpush3.msra.mxu1 %v2085_v20 }
 0x456   :  { %1697 = vmatprep.subr.mxu1 %v2008_v0 }
 0x457   :  { %1698 = vmatpush3.msra.mxu1 %v2090_v22 }
 0x458   :  { %1699 = vmatprep.subr.mxu1 %v2008_v0 }
 0x459   :  { %1700 = vmatpush3.msra.mxu1 %v2095_v24 }
 0x45a   :  { %1701 = vmatprep.subr.mxu1 %v2008_v0 }
 0x45b   :  { %1702 = vmatpush3.msra.mxu1 %v2100_v26 }
 0x45c   :  { %1703 = vmatprep.subr.mxu1 %v2008_v0 }
 0x45d   :  { %1704 = vmatpush3.msra.mxu1 %v2105_v28 }
 0x45e   :  { %1705 = vmatprep.subr.mxu1 %v2008_v0 }
 0x45f   :  { %1706 = vmatpush3.msra.mxu1 %v2110_v31 }
 0x460   :  { %1707 = vmatprep.subr.mxu1 %v2008_v0 }
 0x461   :  { %1708 = vmatpush3.msra.mxu1 %v2148_v32 }
 0x462   :  { %1709 = vmatprep.subr.mxu1 %v2008_v0 }
 0x463   :  { %1710 = vmatpush3.msra.mxu1 %v2153_v33 }
 0x464   :  { %1749 = vmatprep.subr.mxu1 %v2008_v0 }
 0x504   :  { %v556_v49 = vpop.f32.mrf.mxu1 }
 0x505   :  { %v557_v50 = vadd.f32 1e-05, %v556_v49 }
 0x506   :  { %v1643_v51 = vpop.f32.mrf.mxu1 }
 0x507   :  { %1901 = vrsqrt.f32 %v557_v50 }
 0x514   :  { %v1902_v52 = vpop.eup %1901 }
 0x515   :  { %v561_v54 = vmul.f32 %v1902_v52, %v2256_v25  ;;  %v843_v25 = vld [vmem:[#allocation7 + $0x1c0] sm:$0xff] }
 0x517   :  { %v566_v56 = vmul.f32 %v1204_v53, %v561_v54 }
 0x519   :  { %v571_v57 = vadd.f32 %v1205_v55, %v566_v56  ;;  %v1913_v55 = vld [vmem:[#allocation7 + $0x2f8] sm:$0xff]  ;;  %v1914_v56 = vld [vmem:[#allocation7 + $0x2f0] sm:$0xff] }
 0x51b   :  { %v572_v58 = vmul.f32 0.5, %v571_v57 }
 0x51d   :  { %1903 = vtanh.f32 %v572_v58  ;;  %v1916_v58 = vld [vmem:[#allocation7 + $0x2e0] sm:$0xff] }
 0x52a   :  { %v1904_v59 = vpop.eup %1903 }
 0x52b   :  { %v574_v60 = vadd.f32 1.0, %v1904_v59  ;;  %v1103_v59 = vld [vmem:[#allocation7 + $0x258] sm:$0xff] }
 0x52d   :  { %v575_v61 = vmul.f32 0.5, %v574_v60  ;;  %v1102_v60 = vld [vmem:[#allocation7 + $0x250] sm:$0xff] }
 0x52f   :  { %v576_v62 = vmul.f32 %v575_v61, %v571_v57  ;;  %v1915_v57 = vld [vmem:[#allocation7 + $0x2e8] sm:$0xff] }
 0x530   :  { %v1101_v61 = vld [vmem:[#allocation7 + $0x248] sm:$0xff] }
 0x531   :  { %v577_v63 = vadd.f32 %v576_v62, %v2217_v13  ;;  %v1100_v62 = vld [vmem:[#allocation7 + $0x240] sm:$0xff] }
 0x533   :  { %v2312_v1 = vmul.f32 0.70710677, %v577_v63  ;;  %v1099_v63 = vld [vmem:[#allocation7 + $0x238] sm:$0xff] }
 0x535   :  { %1677 = vmatmul.mubr.f32.vlgmr.msra.gmra.mxu0 %v2312_v1 }
 0x536   :  { %1715 = vmatpush3.msra.mxu0 %v2048_v5  ;;  %1746 = vmatprep.mubr.msk.f32.mxu0 %vm2009_vm0, %v2008_v0 }
 0x537   :  { %1716 = vmatprep.subr.mxu0 %v2008_v0 }
 0x538   :  { %1717 = vmatpush3.msra.mxu0 %v2052_v7 }
 0x539   :  { %1718 = vmatprep.subr.mxu0 %v2008_v0 }
 0x53a   :  { %1719 = vmatpush3.msra.mxu0 %v2055_v8 }
 0x53b   :  { %1720 = vmatprep.subr.mxu0 %v2008_v0 }
 0x53c   :  { %1721 = vmatpush3.msra.mxu0 %v2060_v10 }
 0x53d   :  { %1722 = vmatprep.subr.mxu0 %v2008_v0 }
 0x53e   :  { %1723 = vmatpush3.msra.mxu0 %v2065_v12 }
 0x53f   :  { %1724 = vmatprep.subr.mxu0 %v2008_v0 }
 0x540   :  { %1725 = vmatpush3.msra.mxu0 %v2070_v14 }
 0x541   :  { %1726 = vmatprep.subr.mxu0 %v2008_v0 }
 0x542   :  { %1727 = vmatpush3.msra.mxu0 %v2075_v16 }
 0x543   :  { %1728 = vmatprep.subr.mxu0 %v2008_v0 }
 0x544   :  { %1729 = vmatpush3.msra.mxu0 %v2080_v18 }
 0x545   :  { %1730 = vmatprep.subr.mxu0 %v2008_v0 }
 0x546   :  { %1731 = vmatpush3.msra.mxu0 %v2085_v20 }
 0x547   :  { %1732 = vmatprep.subr.mxu0 %v2008_v0 }
 0x548   :  { %1733 = vmatpush3.msra.mxu0 %v2090_v22 }
 0x549   :  { %1734 = vmatprep.subr.mxu0 %v2008_v0 }
 0x54a   :  { %1735 = vmatpush3.msra.mxu0 %v2095_v24 }
 0x54b   :  { %1736 = vmatprep.subr.mxu0 %v2008_v0 }
 0x54c   :  { %1737 = vmatpush3.msra.mxu0 %v2100_v26 }
 0x54d   :  { %1738 = vmatprep.subr.mxu0 %v2008_v0 }
 0x54e   :  { %1739 = vmatpush3.msra.mxu0 %v2105_v28 }
 0x54f   :  { %1740 = vmatprep.subr.mxu0 %v2008_v0 }
 0x550   :  { %1741 = vmatpush3.msra.mxu0 %v2110_v31 }
 0x551   :  { %1742 = vmatprep.subr.mxu0 %v2008_v0 }
 0x552   :  { %1743 = vmatpush3.msra.mxu0 %v2148_v32 }
 0x553   :  { %1744 = vmatprep.subr.mxu0 %v2008_v0 }
 0x554   :  { %1745 = vmatpush3.msra.mxu0 %v2153_v33 }
 0x555   :  { %1784 = vmatprep.subr.mxu0 %v2008_v0 }
 0x5f5   :  { %v667_v3 = vpop.f32.mrf.mxu0 }
 0x5f6   :  { %v668_v4 = vadd.f32 %v1206_v2, %v667_v3  ;;  %v1097_v2 = vld [vmem:[#allocation7 + $0x228] sm:$0xff]  ;;  %v1096_v3 = vld [vmem:[#allocation7 + $0x220] sm:$0xff] }
 0x5f7   :  { %v1678_v6 = vpop.f32.mrf.mxu0 }
 0x5f8   :  { %1712 = vmatmul.mubr.f32.vlgmr.msra.gmra.mxu1 %v668_v4  ;;  %v1094_v6 = vld [vmem:[#allocation7 + $0x210] sm:$0xff] }
 0x5f9   :  { %1781 = vmatprep.mubr.msk.f32.mxu1 %vm2009_vm0, %v2008_v0 }
 0x6b8   :  { %v739_v9 = vpop.f32.mrf.mxu1 }
 0x6b9   :  { %v2351_v11 = vsub.f32 %v668_v4, %v739_v9  ;;  %v1095_v4 = vld [vmem:[#allocation7 + $0x218] sm:$0xff]  ;;  %v1093_v9 = vld [vmem:[#allocation7 + $0x208] sm:$0xff] }
 0x6ba   :  { %v1713_v15 = vpop.f32.mrf.mxu1 }
 0x6bb   :  { %v744_v17 = vmul.f32 %v2351_v11, %v2351_v11 }
 0x6bd   :  { %1747 = vmatmul.mubr.f32.vlgmr.msra.gmra.mxu0 %v744_v17 }
 0x6be   :  { %1785 = vmatpush3.msra.mxu0 %v2048_v5  ;;  %1816 = vmatprep.mubr.msk.f32.mxu0 %vm2009_vm0, %v2008_v0  ;;  %v850_v5 = vld [vmem:[#allocation7 + $0x1f8] sm:$0xff] }
 0x6bf   :  { %1786 = vmatprep.subr.mxu0 %v2008_v0  ;;  %1750 = vmatpush3.msra.mxu1 %v850_v5 }
 0x6c0   :  { %1787 = vmatpush3.msra.mxu0 %v2052_v7  ;;  %v849_v7 = vld [vmem:[#allocation7 + $0x1f0] sm:$0xff]  ;;  %1751 = vmatprep.subr.mxu1 %v2008_v0 }
 0x6c1   :  { %1788 = vmatprep.subr.mxu0 %v2008_v0  ;;  %1752 = vmatpush3.msra.mxu1 %v849_v7 }
 0x6c2   :  { %1789 = vmatpush3.msra.mxu0 %v2055_v8  ;;  %v848_v8 = vld [vmem:[#allocation7 + $0x1e8] sm:$0xff]  ;;  %1753 = vmatprep.subr.mxu1 %v2008_v0 }
 0x6c3   :  { %1790 = vmatprep.subr.mxu0 %v2008_v0  ;;  %1754 = vmatpush3.msra.mxu1 %v848_v8  ;;  %v1210_v8 = vld [vmem:[#allocation5 + $0xa] ss:$0 sm:$0xff] }
 0x6c4   :  { %1791 = vmatpush3.msra.mxu0 %v2060_v10  ;;  %v847_v10 = vld [vmem:[#allocation7 + $0x1e0] sm:$0xff]  ;;  %1755 = vmatprep.subr.mxu1 %v2008_v0 }
 0x6c5   :  { %1792 = vmatprep.subr.mxu0 %v2008_v0  ;;  %1756 = vmatpush3.msra.mxu1 %v847_v10 }
 0x6c6   :  { %1793 = vmatpush3.msra.mxu0 %v2065_v12  ;;  %1757 = vmatprep.subr.mxu1 %v2008_v0 }
 0x6c7   :  { %1794 = vmatprep.subr.mxu0 %v2008_v0  ;;  %1758 = vmatpush3.msra.mxu1 %v846_v19  ;;  %v1211_v19 = vld [vmem:[#allocation5 + $0xb] ss:$0 sm:$0xff] }
 0x6c8   :  { %1795 = vmatpush3.msra.mxu0 %v2070_v14  ;;  %1759 = vmatprep.subr.mxu1 %v2008_v0 }
 0x6c9   :  { %1796 = vmatprep.subr.mxu0 %v2008_v0  ;;  %1760 = vmatpush3.msra.mxu1 %v845_v21 }
 0x6ca   :  { %1797 = vmatpush3.msra.mxu0 %v2075_v16  ;;  %1761 = vmatprep.subr.mxu1 %v2008_v0 }
 0x6cb   :  { %1798 = vmatprep.subr.mxu0 %v2008_v0  ;;  %1762 = vmatpush3.msra.mxu1 %v844_v23 }
 0x6cc   :  { %1799 = vmatpush3.msra.mxu0 %v2080_v18  ;;  %1763 = vmatprep.subr.mxu1 %v2008_v0 }
 0x6cd   :  { %1800 = vmatprep.subr.mxu0 %v2008_v0  ;;  %1764 = vmatpush3.msra.mxu1 %v843_v25 }
 0x6ce   :  { %1801 = vmatpush3.msra.mxu0 %v2085_v20  ;;  %1765 = vmatprep.subr.mxu1 %v2008_v0 }
 0x6cf   :  { %1802 = vmatprep.subr.mxu0 %v2008_v0  ;;  %1766 = vmatpush3.msra.mxu1 %v842_v27 }
 0x6d0   :  { %1803 = vmatpush3.msra.mxu0 %v2090_v22  ;;  %1767 = vmatprep.subr.mxu1 %v2008_v0 }
 0x6d1   :  { %1804 = vmatprep.subr.mxu0 %v2008_v0  ;;  %1768 = vmatpush3.msra.mxu1 %v841_v29 }
 0x6d2   :  { %1805 = vmatpush3.msra.mxu0 %v2095_v24  ;;  %1769 = vmatprep.subr.mxu1 %v2008_v0 }
 0x6d3   :  { %1806 = vmatprep.subr.mxu0 %v2008_v0  ;;  %1770 = vmatpush3.msra.mxu1 %v840_v30 }
 0x6d4   :  { %1807 = vmatpush3.msra.mxu0 %v2100_v26  ;;  %1771 = vmatprep.subr.mxu1 %v2008_v0 }
 0x6d5   :  { %1808 = vmatprep.subr.mxu0 %v2008_v0  ;;  %1772 = vmatpush3.msra.mxu1 %v839_v34 }
 0x6d6   :  { %1809 = vmatpush3.msra.mxu0 %v2105_v28  ;;  %1773 = vmatprep.subr.mxu1 %v2008_v0 }
 0x6d7   :  { %1810 = vmatprep.subr.mxu0 %v2008_v0  ;;  %1774 = vmatpush3.msra.mxu1 %v838_v35 }
 0x6d8   :  { %1811 = vmatpush3.msra.mxu0 %v2110_v31  ;;  %1775 = vmatprep.subr.mxu1 %v2008_v0 }
 0x6d9   :  { %1812 = vmatprep.subr.mxu0 %v2008_v0  ;;  %1776 = vmatpush3.msra.mxu1 %v837_v36 }
 0x6da   :  { %1813 = vmatpush3.msra.mxu0 %v2148_v32  ;;  %1777 = vmatprep.subr.mxu1 %v2008_v0 }
 0x6db   :  { %1814 = vmatprep.subr.mxu0 %v2008_v0  ;;  %1778 = vmatpush3.msra.mxu1 %v836_v37 }
 0x6dc   :  { %1815 = vmatpush3.msra.mxu0 %v2153_v33  ;;  %1779 = vmatprep.subr.mxu1 %v2008_v0 }
 0x6dd   :  { %1854 = vmatprep.subr.mxu0 %v2008_v0  ;;  %1780 = vmatpush3.msra.mxu1 %v835_v38  ;;  %v1212_v38 = vld [vmem:[#allocation5 + $0xc] ss:$0 sm:$0xff] }
 0x6de   :  { %1819 = vmatprep.subr.mxu1 %v2008_v0 }
 0x77d   :  { %v811_v39 = vpop.f32.mrf.mxu0 }
 0x77e   :  { %v812_v40 = vadd.f32 1e-05, %v811_v39 }
 0x77f   :  { %v1748_v41 = vpop.f32.mrf.mxu0 }
 0x780   :  { %1905 = vrsqrt.f32 %v812_v40 }
 0x78d   :  { %v1906_v42 = vpop.eup %1905 }
 0x78e   :  { %v816_v44 = vmul.f32 %v1906_v42, %v2351_v11  ;;  %v1092_v11 = vld [vmem:[#allocation7 + $0x200] sm:$0xff] }
 0x790   :  { %v821_v46 = vmul.f32 %v1207_v43, %v816_v44 }
 0x792   :  { %v826_v47 = vadd.f32 %v1208_v45, %v821_v46 }
 0x794   :  { %v827_v48 = vmul.f32 0.5, %v826_v47 }
 0x796   :  { %1907 = vtanh.f32 %v827_v48 }
 0x7a3   :  { %v1908_v49 = vpop.eup %1907 }
 0x7a4   :  { %v829_v50 = vadd.f32 1.0, %v1908_v49 }
 0x7a6   :  { %v830_v51 = vmul.f32 0.5, %v829_v50 }
 0x7a8   :  { %v831_v52 = vmul.f32 %v830_v51, %v826_v47 }
 0x7aa   :  { %v832_v53 = vadd.f32 %v831_v52, %v2312_v1  ;;  %v1098_v1 = vld [vmem:[#allocation7 + $0x230] sm:$0xff] }
 0x7ac   :  { %v2407_v54 = vmul.f32 0.70710677, %v832_v53 }
 0x7ae   :  { %1782 = vmatmul.mubr.f32.vlgmr.msra.gmra.mxu1 %v2407_v54 }
 0x7af   :  { %1820 = vmatpush3.msra.mxu1 %v1913_v55  ;;  %1851 = vmatprep.mubr.msk.f32.mxu1 %vm2009_vm0, %v2008_v0 }
 0x7b0   :  { %1821 = vmatprep.subr.mxu1 %v2008_v0 }
 0x7b1   :  { %1822 = vmatpush3.msra.mxu1 %v1914_v56 }
 0x7b2   :  { %1823 = vmatprep.subr.mxu1 %v2008_v0 }
 0x7b3   :  { %1824 = vmatpush3.msra.mxu1 %v1915_v57 }
 0x7b4   :  { %1825 = vmatprep.subr.mxu1 %v2008_v0 }
 0x7b5   :  { %1826 = vmatpush3.msra.mxu1 %v1916_v58 }
 0x7b6   :  { %1827 = vmatprep.subr.mxu1 %v2008_v0 }
 0x7b7   :  { %1828 = vmatpush3.msra.mxu1 %v2065_v12  ;;  %v1209_v12 = vld [vmem:[#allocation5 + $0x9] ss:$0 sm:$0xff] }
 0x7b8   :  { %1829 = vmatprep.subr.mxu1 %v2008_v0 }
 0x7b9   :  { %1830 = vmatpush3.msra.mxu1 %v2070_v14 }
 0x7ba   :  { %1831 = vmatprep.subr.mxu1 %v2008_v0 }
 0x7bb   :  { %1832 = vmatpush3.msra.mxu1 %v2075_v16 }
 0x7bc   :  { %1833 = vmatprep.subr.mxu1 %v2008_v0 }
 0x7bd   :  { %1834 = vmatpush3.msra.mxu1 %v2080_v18 }
 0x7be   :  { %1835 = vmatprep.subr.mxu1 %v2008_v0 }
 0x7bf   :  { %1836 = vmatpush3.msra.mxu1 %v2085_v20 }
 0x7c0   :  { %1837 = vmatprep.subr.mxu1 %v2008_v0 }
 0x7c1   :  { %1838 = vmatpush3.msra.mxu1 %v2090_v22 }
 0x7c2   :  { %1839 = vmatprep.subr.mxu1 %v2008_v0 }
 0x7c3   :  { %1840 = vmatpush3.msra.mxu1 %v2095_v24 }
 0x7c4   :  { %1841 = vmatprep.subr.mxu1 %v2008_v0 }
 0x7c5   :  { %1842 = vmatpush3.msra.mxu1 %v2100_v26 }
 0x7c6   :  { %1843 = vmatprep.subr.mxu1 %v2008_v0 }
 0x7c7   :  { %1844 = vmatpush3.msra.mxu1 %v2105_v28  ;;  %v1107_v28 = vld [vmem:[#allocation7 + $0x278] sm:$0xff] }
 0x7c8   :  { %1845 = vmatprep.subr.mxu1 %v2008_v0 }
 0x7c9   :  { %1846 = vmatpush3.msra.mxu1 %v2110_v31  ;;  %v1106_v31 = vld [vmem:[#allocation7 + $0x270] sm:$0xff] }
 0x7ca   :  { %1847 = vmatprep.subr.mxu1 %v2008_v0 }
 0x7cb   :  { %1848 = vmatpush3.msra.mxu1 %v2148_v32  ;;  %v1105_v32 = vld [vmem:[#allocation7 + $0x268] sm:$0xff] }
 0x7cc   :  { %1849 = vmatprep.subr.mxu1 %v2008_v0 }
 0x7cd   :  { %1850 = vmatpush3.msra.mxu1 %v2153_v33  ;;  %v1104_v33 = vld [vmem:[#allocation7 + $0x260] sm:$0xff] }
 0x86e   :  { %v922_v14 = vpop.f32.mrf.mxu1 }
 0x86f   :  { %v923_v16 = vadd.f32 %v1209_v12, %v922_v14 }
 0x870   :  { %v1783_v18 = vpop.f32.mrf.mxu1 }
 0x871   :  { %1817 = vmatmul.mubr.f32.vlgmr.msra.gmra.mxu0 %v923_v16 }
 0x872   :  { %1886 = vmatprep.mubr.msk.f32.mxu0 %vm2009_vm0, %v2008_v0  ;;  %1855 = vmatpush3.msra.mxu0 %v1107_v28 }
 0x873   :  { %1856 = vmatprep.subr.mxu0 %v2008_v0 }
 0x874   :  { %1857 = vmatpush3.msra.mxu0 %v1106_v31 }
 0x875   :  { %1858 = vmatprep.subr.mxu0 %v2008_v0 }
 0x876   :  { %1859 = vmatpush3.msra.mxu0 %v1105_v32 }
 0x877   :  { %1860 = vmatprep.subr.mxu0 %v2008_v0 }
 0x878   :  { %1861 = vmatpush3.msra.mxu0 %v1104_v33 }
 0x879   :  { %1862 = vmatprep.subr.mxu0 %v2008_v0 }
 0x87a   :  { %1863 = vmatpush3.msra.mxu0 %v1103_v59 }
 0x87b   :  { %1864 = vmatprep.subr.mxu0 %v2008_v0 }
 0x87c   :  { %1865 = vmatpush3.msra.mxu0 %v1102_v60 }
 0x87d   :  { %1866 = vmatprep.subr.mxu0 %v2008_v0 }
 0x87e   :  { %1867 = vmatpush3.msra.mxu0 %v1101_v61 }
 0x87f   :  { %1868 = vmatprep.subr.mxu0 %v2008_v0 }
 0x880   :  { %1869 = vmatpush3.msra.mxu0 %v1100_v62 }
 0x881   :  { %1870 = vmatprep.subr.mxu0 %v2008_v0 }
 0x882   :  { %1871 = vmatpush3.msra.mxu0 %v1099_v63 }
 0x883   :  { %1872 = vmatprep.subr.mxu0 %v2008_v0 }
 0x884   :  { %1873 = vmatpush3.msra.mxu0 %v1098_v1 }
 0x885   :  { %1874 = vmatprep.subr.mxu0 %v2008_v0 }
 0x886   :  { %1875 = vmatpush3.msra.mxu0 %v1097_v2 }
 0x887   :  { %1876 = vmatprep.subr.mxu0 %v2008_v0 }
 0x888   :  { %1877 = vmatpush3.msra.mxu0 %v1096_v3 }
 0x889   :  { %1878 = vmatprep.subr.mxu0 %v2008_v0 }
 0x88a   :  { %1879 = vmatpush3.msra.mxu0 %v1095_v4 }
 0x88b   :  { %1880 = vmatprep.subr.mxu0 %v2008_v0 }
 0x88c   :  { %1881 = vmatpush3.msra.mxu0 %v1094_v6 }
 0x88d   :  { %1882 = vmatprep.subr.mxu0 %v2008_v0 }
 0x88e   :  { %1883 = vmatpush3.msra.mxu0 %v1093_v9 }
 0x88f   :  { %1884 = vmatprep.subr.mxu0 %v2008_v0 }
 0x890   :  { %1885 = vmatpush3.msra.mxu0 %v1092_v11 }
 0x931   :  { %v994_v20 = vpop.f32.mrf.mxu0 }
 0x932   :  { %v998_v22 = vsub.f32 %v923_v16, %v994_v20 }
 0x933   :  { %v1818_v24 = vpop.f32.mrf.mxu0 }
 0x934   :  { %v999_v26 = vmul.f32 %v998_v22, %v998_v22 }
 0x936   :  { %1852 = vmatmul.mubr.f32.vlgmr.msra.gmra.mxu1 %v999_v26 }
 0x9f6   :  { %v1066_v15 = vpop.f32.mrf.mxu1 }
 0x9f7   :  { %v1067_v17 = vadd.f32 1e-05, %v1066_v15 }
 0x9f8   :  { %v1853_v5 = vpop.f32.mrf.mxu1 }
 0x9f9   :  { %1909 = vrsqrt.f32 %v1067_v17 }
 0xa06   :  { %v1910_v7 = vpop.eup %1909 }
 0xa07   :  { %v1071_v10 = vmul.f32 %v1910_v7, %v998_v22 }
 0xa09   :  { %v1076_v21 = vmul.f32 %v1210_v8, %v1071_v10 }
 0xa0b   :  { %v1081_v23 = vadd.f32 %v1211_v19, %v1076_v21 }
 0xa0d   :  { %v1082_v25 = vmul.f32 0.5, %v1081_v23 }
 0xa0f   :  { %1911 = vtanh.f32 %v1082_v25 }
 0xa1c   :  { %v1912_v27 = vpop.eup %1911 }
 0xa1d   :  { %v1084_v29 = vadd.f32 1.0, %v1912_v27 }
 0xa1f   :  { %v1085_v30 = vmul.f32 0.5, %v1084_v29 }
 0xa21   :  { %v1086_v34 = vmul.f32 %v1085_v30, %v1081_v23 }
 0xa23   :  { %v1087_v35 = vadd.f32 %v1086_v34, %v2407_v54 }
 0xa25   :  { %v1088_v0 = vmul.f32 0.70710677, %v1087_v35 }
 0xa27   :  { %v1089_v36 = vadd.f32 %v1088_v0, %v2217_v13 }
 0xa29   :  { %v1090_v37 = vmul.f32 0.70710677, %v1089_v36 }
 0xa2b   :  { %1887 = vmatmul.mubr.f32.vlgmr.msra.gmra.mxu0 %v1090_v37 }
 0xaeb   :  { %v1179_v39 = vpop.f32.mrf.mxu0 }
 0xaec   :  { %v1180_v40 = vadd.f32 %v1212_v38, %v1179_v39 }
 0xaed   :  { %v1888_v41 = vpop.f32.mrf.mxu0 }
 0xaee   :  { %1183 = vst [vmem:[#allocation8] sm:$0xff] %v1180_v40 }
 0xaef   :  { %1988 = shalt.err (!%p1985_p5)
}
 0xaf0   :  { %1193 = dma.vmem_to_hbm [thread:$0]  %s1191_s2, 128, %s2464_s3, [#allocation4]  }
 0xaf1   :  { %2001 = dma.done.wait [#allocation4], 128  }
 0xaf2   :  { %2002 = vsyncadd [#allocation4], 4294967168 }
 0xaf3   :  { %1197 = vsyncpa [#allocation3], 1 }
 0xaf4   :  { %1198 = vsyncpa [#allocation6], 1 }
 0xaf5   :  { %1199 = vsyncpa [#allocation4], 1 }

</bundles_post_ra>
